<compile_context>
chip_gen: v7x
topology: tpu7x:2x2x1
jax: 0.10.0
libtpu: 0.0.40
codegen_flags: <defaults>
</compile_context>

<pallas_src>
import functools
import math

import jax
import jax.numpy as jnp
from jax import lax
from jax.experimental import pallas as pl
from jax.experimental.pallas import tpu as pltpu

EPS = 1e-6
NEG_INF_FILL = -1e9  # torch masked_fill value in the reference model


# --------------------------------------------------------------------------
# Kernel 1: fused pre-LayerNorm + matmul (+ bias, optional ReLU)
# --------------------------------------------------------------------------
def ln_matmul_kernel(x_ref, g_ref, beta_ref, w_ref, b_ref, o_ref, *, apply_relu):
    x = x_ref[...]                                   # (tm, Din), native dtype
    xf = x.astype(jnp.float32)                       # LN epilogue math in f32
    din = xf.shape[-1]

    mean = jnp.mean(xf, axis=-1, keepdims=True)
    cen = xf - mean
    var = jnp.sum(cen * cen, axis=-1, keepdims=True) / (din - 1)   # unbiased
    # one [tm,1] reciprocal (EUP) instead of a [tm,Din] divide (VALU)
    inv = pl.reciprocal(jnp.sqrt(var) + EPS, approx=False)
    normed = g_ref[...].astype(jnp.float32) * (cen * inv) + beta_ref[...].astype(jnp.float32)

    # MXU matmul; weight is pre-transposed to [Din, Dout] so no in-kernel w.T.
    y = jnp.dot(normed.astype(w_ref.dtype), w_ref[...],
                preferred_element_type=jnp.float32)
    y = y + b_ref[...].astype(jnp.float32)
    if apply_relu:
        y = jnp.maximum(y, 0.0)
    o_ref[...] = y.astype(o_ref.dtype)


def ln_matmul(x, gamma, beta, w_t, bias, *, apply_relu, tm):
    """out = [ReLU]( LayerNorm(x) @ w_t + bias ), x: (M, Din), w_t: (Din, Dout)."""
    M, Din = x.shape
    Dout = w_t.shape[1]
    assert M % tm == 0
    # NOTE: full weight is VMEM-resident here; for very large Din add a K grid
    # axis + f32 accumulator scratch (LayerNorm stays valid since Dout is whole).
    kernel = functools.partial(ln_matmul_kernel, apply_relu=apply_relu)
    itemsize = jnp.dtype(x.dtype).itemsize
    return pl.pallas_call(
        kernel,
        out_shape=jax.ShapeDtypeStruct((M, Dout), x.dtype),
        grid_spec=pltpu.PrefetchScalarGridSpec(
            num_scalar_prefetch=0,
            grid=(M // tm,),
            in_specs=[
                pl.BlockSpec((tm, Din), lambda i: (i, 0)),       # x rows
                pl.BlockSpec((1, Din), lambda i: (0, 0)),        # LN gamma
                pl.BlockSpec((1, Din), lambda i: (0, 0)),        # LN beta
                pl.BlockSpec((Din, Dout), lambda i: (0, 0)),     # W (pre-transposed)
                pl.BlockSpec((1, Dout), lambda i: (0, 0)),       # bias
            ],
            out_specs=pl.BlockSpec((tm, Dout), lambda i: (i, 0)),
        ),
        compiler_params=pltpu.CompilerParams(dimension_semantics=("parallel",)),
        cost_estimate=pl.CostEstimate(
            flops=2 * M * Din * Dout,
            transcendentals=2 * M,  # per-row sqrt + reciprocal
            bytes_accessed=(M * Din + Din * Dout + M * Dout) * itemsize,
        ),
    )(x, gamma.reshape(1, Din), beta.reshape(1, Din), w_t, bias.reshape(1, Dout))


# --------------------------------------------------------------------------
# Kernel 2: scaled-dot-product attention, one (batch, head) per grid step
# --------------------------------------------------------------------------
def attn_kernel(q_ref, k_ref, v_ref, pad_ref, srcm_ref, o_ref, *, scale):
    q = q_ref[0]                                     # (S, dk)
    k = k_ref[0]                                     # (S, dk)
    v = v_ref[0]                                     # (S, dk)

    # scores = q @ k^T / sqrt(dk): contract last axes directly (no transpose).
    s = lax.dot_general(q, k, dimension_numbers=(((1,), (1,)), ((), ())),
                        preferred_element_type=jnp.float32) * scale      # (S, S)

    pad = pad_ref[0]                                 # (1, S) -> broadcast over query rows
    s = jnp.where(pad == 0, NEG_INF_FILL, s)         # masked_fill semantics
    s = s + srcm_ref[0].astype(jnp.float32)          # additive src_mask

    m = jnp.max(s, axis=-1, keepdims=True)
    p = jnp.exp(s - m)
    denom = jnp.sum(p, axis=-1, keepdims=True)
    p = p * pl.reciprocal(denom, approx=False)       # [S,1] reciprocal, not [S,S] divide

    out = lax.dot_general(p.astype(v.dtype), v,
                          dimension_numbers=(((1,), (0,)), ((), ())),
                          preferred_element_type=jnp.float32)            # (S, dk)
    o_ref[0] = out.astype(o_ref.dtype)


def multihead_attention(q, k, v, pad_mask, src_mask, *, num_heads):
    """q/k/v: (B*H, S, dk); pad_mask: (B, 1, S) float; src_mask: (1, S, S)."""
    BH, S, dk = q.shape
    H = num_heads
    kernel = functools.partial(attn_kernel, scale=1.0 / math.sqrt(dk))
    itemsize = jnp.dtype(q.dtype).itemsize
    return pl.pallas_call(
        kernel,
        out_shape=jax.ShapeDtypeStruct((BH, S, dk), q.dtype),
        grid_spec=pltpu.PrefetchScalarGridSpec(
            num_scalar_prefetch=0,
            grid=(BH,),
            in_specs=[
                pl.BlockSpec((1, S, dk), lambda i: (i, 0, 0)),   # q
                pl.BlockSpec((1, S, dk), lambda i: (i, 0, 0)),   # k
                pl.BlockSpec((1, S, dk), lambda i: (i, 0, 0)),   # v
                pl.BlockSpec((1, 1, S), lambda i: (i // H, 0, 0)),  # pad mask (per batch)
                pl.BlockSpec((1, S, S), lambda i: (0, 0, 0)),    # additive src mask
            ],
            out_specs=pl.BlockSpec((1, S, dk), lambda i: (i, 0, 0)),
        ),
        compiler_params=pltpu.CompilerParams(dimension_semantics=("parallel",)),
        cost_estimate=pl.CostEstimate(
            flops=4 * BH * S * S * dk,
            transcendentals=BH * S * S,
            bytes_accessed=(4 * BH * S * dk + S * S) * itemsize,
        ),
    )(q, k, v, pad_mask, src_mask)


# --------------------------------------------------------------------------
# Kernel 3: matmul + bias + residual add
# --------------------------------------------------------------------------
def matmul_res_kernel(x_ref, w_ref, b_ref, r_ref, o_ref):
    y = jnp.dot(x_ref[...], w_ref[...], preferred_element_type=jnp.float32)
    y = y + b_ref[...].astype(jnp.float32) + r_ref[...].astype(jnp.float32)
    o_ref[...] = y.astype(o_ref.dtype)


def matmul_bias_residual(x, w_t, bias, residual, *, tm):
    """out = residual + (x @ w_t + bias), x: (M, Din), w_t: (Din, Dout)."""
    M, Din = x.shape
    Dout = w_t.shape[1]
    assert M % tm == 0
    itemsize = jnp.dtype(x.dtype).itemsize
    return pl.pallas_call(
        matmul_res_kernel,
        out_shape=jax.ShapeDtypeStruct((M, Dout), residual.dtype),
        grid_spec=pltpu.PrefetchScalarGridSpec(
            num_scalar_prefetch=0,
            grid=(M // tm,),
            in_specs=[
                pl.BlockSpec((tm, Din), lambda i: (i, 0)),       # x rows
                pl.BlockSpec((Din, Dout), lambda i: (0, 0)),     # W (pre-transposed)
                pl.BlockSpec((1, Dout), lambda i: (0, 0)),       # bias
                pl.BlockSpec((tm, Dout), lambda i: (i, 0)),      # residual rows
            ],
            out_specs=pl.BlockSpec((tm, Dout), lambda i: (i, 0)),
        ),
        compiler_params=pltpu.CompilerParams(dimension_semantics=("parallel",)),
        cost_estimate=pl.CostEstimate(
            flops=2 * M * Din * Dout,
            transcendentals=0,
            bytes_accessed=(M * Din + Din * Dout + 2 * M * Dout) * itemsize,
        ),
    )(x, w_t, bias.reshape(1, Dout), residual)


# --------------------------------------------------------------------------
# EncoderLayer forward
# --------------------------------------------------------------------------
def _row_tile(M, requested=256):
    """Largest row tile <= requested that divides M and is a multiple of 8 (else M)."""
    if M <= requested:
        return M
    t = (requested // 8) * 8
    while t >= 8:
        if M % t == 0:
            return t
        t -= 8
    return M


def encoder_layer(x, src_mask, pad_mask, params, *, num_heads, tm=256):
    """x: (B, S, D); src_mask: (S, S) additive; pad_mask: (B, S) 0/1."""
    B, S, D = x.shape
    H = num_heads
    dk = D // H
    M = B * S
    tm = _row_tile(M, tm)   # for bf16 inputs, round tm to a multiple of 16

    x2 = x.reshape(M, D)

    # ---- SublayerConnection 0: pre-LN + self-attention + residual ----
    # Fuse Wq/Wk/Wv into one (D, 3D) weight (pre-transposed once, outside kernels).
    wqkv_t = jnp.concatenate([params["wq"], params["wk"], params["wv"]], axis=0).T
    bqkv = jnp.concatenate([params["bq"], params["bk"], params["bv"]])

    qkv = ln_matmul(x2, params["ln0_g"], params["ln0_b"], wqkv_t, bqkv,
                    apply_relu=False, tm=tm)                              # (M, 3D)
    q, k, v = jnp.split(qkv, 3, axis=-1)

    def to_heads(t):  # (M, D) -> (B*H, S, dk)   (layout plumbing outside kernels)
        return t.reshape(B, S, H, dk).transpose(0, 2, 1, 3).reshape(B * H, S, dk)

    qh, kh, vh = to_heads(q), to_heads(k), to_heads(v)

    attn = multihead_attention(
        qh, kh, vh,
        pad_mask.astype(jnp.float32).reshape(B, 1, S),
        src_mask.astype(jnp.float32).reshape(1, S, S),
        num_heads=H)                                                      # (B*H, S, dk)
    attn2 = attn.reshape(B, H, S, dk).transpose(0, 2, 1, 3).reshape(M, D)

    x2 = matmul_bias_residual(attn2, params["wo"].T, params["bo"], x2, tm=tm)  # (M, D)

    # ---- SublayerConnection 1: pre-LN + FFN + residual ----
    h = ln_matmul(x2, params["ln1_g"], params["ln1_b"], params["w1"].T, params["b1"],
                  apply_relu=True, tm=tm)                                  # (M, d_ff)
    out = matmul_bias_residual(h, params["w2"].T, params["b2"], x2, tm=tm)  # (M, D)

    return out.reshape(B, S, D)


# --------------------------------------------------------------------------
# Pure-JAX reference (mirrors the torch module, eval mode)
# --------------------------------------------------------------------------
def reference(x, src_mask, pad_mask, params, *, num_heads):
    def layer_norm(t, g, b):
        mean = jnp.mean(t, -1, keepdims=True)
        cen = t - mean
        var = jnp.sum(cen * cen, -1, keepdims=True) / (t.shape[-1] - 1)   # unbiased
        return g * cen / (jnp.sqrt(var) + EPS) + b

    def linear(t, w, b):  # torch convention: w is (out, in)
        return jnp.einsum("...k,dk->...d", t, w) + b

    B, S, D = x.shape
    H = num_heads
    dk = D // H

    n = layer_norm(x, params["ln0_g"], params["ln0_b"])
    q = linear(n, params["wq"], params["bq"]).reshape(B, S, H, dk).transpose(0, 2, 1, 3)
    k = linear(n, params["wk"], params["bk"]).reshape(B, S, H, dk).transpose(0, 2, 1, 3)
    v = linear(n, params["wv"], params["bv"]).reshape(B, S, H, dk).transpose(0, 2, 1, 3)

    scores = jnp.einsum("bhqd,bhkd->bhqk", q, k) / math.sqrt(dk)
    scores = jnp.where(pad_mask[:, None, None, :] == 0, NEG_INF_FILL, scores)
    scores = scores + src_mask[None, None, :, :]
    p = jax.nn.softmax(scores, axis=-1)
    att = jnp.einsum("bhqk,bhkd->bhqd", p, v).transpose(0, 2, 1, 3).reshape(B, S, D)

    x1 = x + linear(att, params["wo"], params["bo"])
    n1 = layer_norm(x1, params["ln1_g"], params["ln1_b"])
    ff = linear(jnp.maximum(linear(n1, params["w1"], params["b1"]), 0.0),
                params["w2"], params["b2"])
    return x1 + ff


# --------------------------------------------------------------------------
if __name__ == "__main__":
    key = jax.random.PRNGKey(0)
    batch, seq, d_model, num_heads, d_ff = 2, 8, 32, 4, 64

    keys = jax.random.split(key, 16)

    def lin_init(kw, kb, dout, din):
        bound = 1.0 / math.sqrt(din)
        w = jax.random.uniform(kw, (dout, din), jnp.float32, -bound, bound)
        b = jax.random.uniform(kb, (dout,), jnp.float32, -bound, bound)
        return w, b

    wq, bq = lin_init(keys[0], keys[1], d_model, d_model)
    wk, bk = lin_init(keys[2], keys[3], d_model, d_model)
    wv, bv = lin_init(keys[4], keys[5], d_model, d_model)
    wo, bo = lin_init(keys[6], keys[7], d_model, d_model)
    w1, b1 = lin_init(keys[8], keys[9], d_ff, d_model)
    w2, b2 = lin_init(keys[10], keys[11], d_model, d_ff)

    params = dict(
        wq=wq, bq=bq, wk=wk, bk=bk, wv=wv, bv=bv, wo=wo, bo=bo,
        w1=w1, b1=b1, w2=w2, b2=b2,
        ln0_g=jnp.ones((d_model,), jnp.float32), ln0_b=jnp.zeros((d_model,), jnp.float32),
        ln1_g=jnp.ones((d_model,), jnp.float32), ln1_b=jnp.zeros((d_model,), jnp.float32),
    )

    x = jax.random.normal(keys[12], (batch, seq, d_model), jnp.float32)
    src_mask = 0.1 * jax.random.normal(keys[13], (seq, seq), jnp.float32)  # additive mask
    pad_mask = jnp.ones((batch, seq), jnp.float32).at[1, seq - 2:].set(0.0)  # batch 1 has 2 padded keys

    out = encoder_layer(x, src_mask, pad_mask, params, num_heads=num_heads)
    jax.block_until_ready(out)

    ref = reference(x, src_mask, pad_mask, params, num_heads=num_heads)
    assert out.shape == (batch, seq, d_model)
    assert jnp.allclose(out, ref, atol=1e-4, rtol=1e-4), float(jnp.max(jnp.abs(out - ref)))

    print("KERNEL_OK")
</pallas_src>

<mosaic_0001>
module attributes {stable_mosaic.version = 11 : i64} {
  func.func @ln_matmul_kernel(%arg0: i32, %arg1: memref<16x32xf32, #tpu.memory_space<vmem>>, %arg2: memref<1x32xf32, #tpu.memory_space<vmem>>, %arg3: memref<1x32xf32, #tpu.memory_space<vmem>>, %arg4: memref<32x96xf32, #tpu.memory_space<vmem>>, %arg5: memref<1x96xf32, #tpu.memory_space<vmem>>, %arg6: memref<16x96xf32, #tpu.memory_space<vmem>>) attributes {dimension_semantics = [#tpu.dimension_semantics<parallel>], iteration_bounds = array<i64: 1>, scalar_prefetch = 0 : i64, scratch_operands = 0 : i64, tpu.core_type = #tpu.core_type<tc>, window_params = [{transform_indices = @transform_0, window_bounds = array<i64: 16, 32>}, {pipeline_mode = #tpu.pipeline_mode<synchronous>, transform_indices = @transform_1, window_bounds = array<i64: 1, 32>}, {pipeline_mode = #tpu.pipeline_mode<synchronous>, transform_indices = @transform_2, window_bounds = array<i64: 1, 32>}, {pipeline_mode = #tpu.pipeline_mode<synchronous>, transform_indices = @transform_3, window_bounds = array<i64: 32, 96>}, {pipeline_mode = #tpu.pipeline_mode<synchronous>, transform_indices = @transform_4, window_bounds = array<i64: 1, 96>}, {transform_indices = @transform_5, window_bounds = array<i64: 16, 96>}]} {
    %c0 = arith.constant 0 : index
    %c0_0 = arith.constant 0 : index
    %0 = vector.load %arg1[%c0, %c0_0] : memref<16x32xf32, #tpu.memory_space<vmem>>, vector<16x32xf32>
    %cst = arith.constant dense<0.000000e+00> : vector<16xf32>
    %1 = vector.multi_reduction <add>, %0, %cst [1] : vector<16x32xf32> to vector<16xf32>
    %2 = vector.shape_cast %1 : vector<16xf32> to vector<16x1xf32>
    %cst_1 = arith.constant 3.200000e+01 : f32
    %3 = vector.broadcast %cst_1 : f32 to vector<16x1xf32>
    %4 = arith.divf %2, %3 : vector<16x1xf32>
    %5 = vector.broadcast %4 : vector<16x1xf32> to vector<16x32xf32>
    %6 = arith.subf %0, %5 : vector<16x32xf32>
    %7 = arith.mulf %6, %6 : vector<16x32xf32>
    %cst_2 = arith.constant dense<0.000000e+00> : vector<16xf32>
    %8 = vector.multi_reduction <add>, %7, %cst_2 [1] : vector<16x32xf32> to vector<16xf32>
    %9 = vector.shape_cast %8 : vector<16xf32> to vector<16x1xf32>
    %cst_3 = arith.constant 3.100000e+01 : f32
    %10 = vector.broadcast %cst_3 : f32 to vector<16x1xf32>
    %11 = arith.divf %9, %10 : vector<16x1xf32>
    %12 = math.sqrt %11 : vector<16x1xf32>
    %cst_4 = arith.constant 9.99999997E-7 : f32
    %13 = vector.broadcast %cst_4 : f32 to vector<16x1xf32>
    %14 = arith.addf %12, %13 : vector<16x1xf32>
    %15 = tpu.reciprocal %14 : vector<16x1xf32> -> vector<16x1xf32>
    %c0_5 = arith.constant 0 : index
    %c0_6 = arith.constant 0 : index
    %16 = vector.load %arg2[%c0_5, %c0_6] : memref<1x32xf32, #tpu.memory_space<vmem>>, vector<1x32xf32>
    %17 = vector.broadcast %15 : vector<16x1xf32> to vector<16x32xf32>
    %18 = arith.mulf %6, %17 : vector<16x32xf32>
    %19 = vector.broadcast %16 : vector<1x32xf32> to vector<16x32xf32>
    %20 = arith.mulf %19, %18 : vector<16x32xf32>
    %c0_7 = arith.constant 0 : index
    %c0_8 = arith.constant 0 : index
    %21 = vector.load %arg3[%c0_7, %c0_8] : memref<1x32xf32, #tpu.memory_space<vmem>>, vector<1x32xf32>
    %22 = vector.broadcast %21 : vector<1x32xf32> to vector<16x32xf32>
    %23 = arith.addf %20, %22 : vector<16x32xf32>
    %c0_9 = arith.constant 0 : index
    %c0_10 = arith.constant 0 : index
    %24 = vector.load %arg4[%c0_9, %c0_10] : memref<32x96xf32, #tpu.memory_space<vmem>>, vector<32x96xf32>
    %cst_11 = arith.constant dense<0.000000e+00> : vector<16x96xf32>
    %25 = tpu.matmul %23, %24, %cst_11 {dimension_numbers = #tpu.dot_dimension_numbers<[1], [0], [0], [1], [0, 0, 1, 1], [], []>} : vector<16x32xf32>, vector<32x96xf32>, vector<16x96xf32> -> vector<16x96xf32>
    %c0_12 = arith.constant 0 : index
    %c0_13 = arith.constant 0 : index
    %26 = vector.load %arg5[%c0_12, %c0_13] : memref<1x96xf32, #tpu.memory_space<vmem>>, vector<1x96xf32>
    %27 = vector.broadcast %26 : vector<1x96xf32> to vector<16x96xf32>
    %28 = arith.addf %25, %27 : vector<16x96xf32>
    %c0_14 = arith.constant 0 : index
    %c0_15 = arith.constant 0 : index
    %29 = vector.load %arg6[%c0_14, %c0_15] : memref<16x96xf32, #tpu.memory_space<vmem>>, vector<16x96xf32>
    tpu.vector_store %arg6[%c0_14, %c0_15], %28 {strides = array<i32>} : memref<16x96xf32, #tpu.memory_space<vmem>>, vector<16x96xf32>,
    return
  }
  func.func @transform_0(%arg0: i32) -> (i32, i32) {
    %c0_i32 = arith.constant 0 : i32
    %c0_i32_0 = arith.constant 0 : i32
    return %arg0, %c0_i32 : i32, i32
  }
  func.func @transform_1(%arg0: i32) -> (i32, i32) {
    %c0_i32 = arith.constant 0 : i32
    %c0_i32_0 = arith.constant 0 : i32
    %c0_i32_1 = arith.constant 0 : i32
    return %c0_i32, %c0_i32_0 : i32, i32
  }
  func.func @transform_2(%arg0: i32) -> (i32, i32) {
    %c0_i32 = arith.constant 0 : i32
    %c0_i32_0 = arith.constant 0 : i32
    %c0_i32_1 = arith.constant 0 : i32
    return %c0_i32, %c0_i32_0 : i32, i32
  }
  func.func @transform_3(%arg0: i32) -> (i32, i32) {
    %c0_i32 = arith.constant 0 : i32
    %c0_i32_0 = arith.constant 0 : i32
    %c0_i32_1 = arith.constant 0 : i32
    return %c0_i32, %c0_i32_0 : i32, i32
  }
  func.func @transform_4(%arg0: i32) -> (i32, i32) {
    %c0_i32 = arith.constant 0 : i32
    %c0_i32_0 = arith.constant 0 : i32
    %c0_i32_1 = arith.constant 0 : i32
    return %c0_i32, %c0_i32_0 : i32, i32
  }
  func.func @transform_5(%arg0: i32) -> (i32, i32) {
    %c0_i32 = arith.constant 0 : i32
    %c0_i32_0 = arith.constant 0 : i32
    return %arg0, %c0_i32 : i32, i32
  }
}

</mosaic_0001>

<bundles_post_ra>
// kernel: tpu_custom_call.1
= control target key start
LH: loop header
LB: loop body
LE: loop exit
PB: predicated region body
PF: predicated region fallthrough
CT: control target
= control target key end

     0   :  { %10 = vsyncpa [#allocation3], 0  ;;  %s435_s0 = inlined_call_operand.hbm [shape: f32[16,32], index: 0, kind: input, shape index: {}]   ;;  %s436_s1 = inlined_call_operand.vmem [shape: f32[1,32], index: 1, kind: input, shape index: {}]   ;;  %s437_s2 = inlined_call_operand.vmem [shape: f32[1,32], index: 2, kind: input, shape index: {}]   ;;  %s438_s3 = inlined_call_operand.hbm [shape: f32[32,96], index: 3, kind: input, shape index: {}]   ;;  %s439_s4 = inlined_call_operand.vmem [shape: f32[1,96], index: 4, kind: input, shape index: {}]   ;;  %s440_s5 = inlined_call_operand.hbm [shape: f32[16,96], index: 5, kind: output, shape index: {}]  }
   0x1   :  { %11 = vsyncpa [#allocation6], 0 }
   0x2   :  { %12 = vsyncpa [#allocation4], 0  ;;  %s340_s18 = smov [#allocation2]   ;;  %s268_s22 = scalar_lea.hbm %s435_s0, 256 }
   0x3   :  { %s18_s19 = sshll.u32 %s340_s18, 4  ;;  %p269_p0 = scmp.ne.s32.totalorder %s435_s0, %s268_s22  ;;  %s19_s19 = int_to_ptr.vmem [resolvable:$true] %s18_s19 }
   0x4   :  { %p272_p1 = scmp.lt.u32.totalorder %s268_s22, %s435_s0 }
   0x6   :  { %p274_p2 = pnand %p272_p1, %p269_p0 }
   0x8   :  { %277 = shalt.err (!%p274_p2)
}
   0x9   :  { %s278_s27 = scalar_lea.vmem %s19_s19, 256  ;;  %p283_p4 = scmp.lt.s32.totalorder %s19_s19, %s19_s19 }
   0xa   :  { %p279_p3 = scmp.ne.s32.totalorder %s19_s19, %s278_s27  ;;  %p284_p5 = scmp.lt.s32.totalorder %s278_s27, %s278_s27 }
   0xc   :  { %p285_p6 = por %p284_p5, %p283_p4 }
   0xe   :  { %p286_p7 = pnand %p285_p6, %p279_p3 }
  0x10   :  { %289 = shalt.err (!%p286_p7)
}
  0x11   :  { %s341_s28 = smov 128   ;;  %s342_s29 = smov 8  }
  0x12   :  { %24 = dma.hbm_to_vmem [thread:$0]  %s435_s0, 256, %s19_s19, [#allocation3], %s341_s28, %s341_s28, %s342_s29  }
  0x13   :  { %s343_s7 = smov [#allocation5]   ;;  %s290_s11 = scalar_lea.hbm %s438_s3, 512 }
  0x14   :  { %s34_s8 = sshll.u32 %s343_s7, 4  ;;  %p291_p8 = scmp.ne.s32.totalorder %s438_s3, %s290_s11  ;;  %s35_s8 = int_to_ptr.vmem [resolvable:$true] %s34_s8 }
  0x15   :  { %p294_p9 = scmp.lt.u32.totalorder %s290_s11, %s438_s3 }
  0x17   :  { %p296_p10 = pnand %p294_p9, %p291_p8 }
  0x19   :  { %299 = shalt.err (!%p296_p10)
}
  0x1a   :  { %s300_s16 = scalar_lea.vmem %s35_s8, 512  ;;  %p305_p12 = scmp.lt.s32.totalorder %s35_s8, %s35_s8 }
  0x1b   :  { %p301_p11 = scmp.ne.s32.totalorder %s35_s8, %s300_s16  ;;  %p306_p13 = scmp.lt.s32.totalorder %s300_s16, %s300_s16 }
  0x1d   :  { %p307_p0 = por %p306_p13, %p305_p12 }
  0x1f   :  { %p308_p1 = pnand %p307_p0, %p301_p11 }
  0x21   :  { %311 = shalt.err (!%p308_p1)
}
  0x22   :  { %40 = dma.hbm_to_vmem [thread:$0]  %s438_s3, 512, %s35_s8, [#allocation6], %s341_s28, %s341_s28, %s342_s29  }
  0x23   :  { %334 = dma.done.wait [#allocation3], 256  }
  0x24   :  { %335 = vsyncadd [#allocation3], 4294967040 }
  0x25   :  { %336 = dma.done.wait [#allocation6], 512  }
  0x26   :  { %337 = vsyncadd [#allocation6], 4294966784  ;;  %vm51_vm0 = vcmask 261120   ;;  %v49_v0 = vld [vmem:[#allocation2] sm:$0xff]  ;;  %v50_v1 = vld [vmem:[#allocation2 + $0x8] sm:$0xff]  ;;  %vm204_vm5 = vcmask 785408  }
  0x27   :  { %v52_v2 = vsel %vm51_vm0, %v49_v0, 0.0  ;;  %v55_v3 = vsel %vm51_vm0, %v50_v1, 0.0  ;;  %v112_v14 = vld [vmem:[#allocation5] sm:$0xff]  ;;  %v113_v15 = vld [vmem:[#allocation5 + $0x8] sm:$0xff]  ;;  %v114_v16 = vld [vmem:[#allocation5 + $0x10] sm:$0xff] }
  0x28   :  { %53 = vadd.xlane.f32.xlu0 %v52_v2  ;;  %v247_v17 = vpack.c.bf16 %v113_v15, %v112_v14  ;;  %v115_v18 = vld [vmem:[#allocation5 + $0x18] sm:$0xff]  ;;  %v225_v37 = vld [vmem:[%s436_s1] ss:$0 sm:$0xff]  ;;  %s344_s1 = smov [#allocation7]  }
  0x29   :  { %v251_v19 = vpack.c.bf16 %v115_v18, %v114_v16  ;;  %v226_v39 = vld [vmem:[%s437_s2] ss:$0 sm:$0xff]  ;;  %s212_s23 = sshll.u32 %s344_s1, 4  ;;  %s213_s23 = int_to_ptr.vmem [resolvable:$true] %s212_s23 }
  0x2a   :  { %248 = vmatprep.subr.bf16.mxu0 %v247_v17  ;;  %v227_v46 = vld [vmem:[%s439_s4] ss:$0 sm:$0xff]  ;;  %s312_s2 = scalar_lea.vmem %s213_s23, 256  ;;  %p317_p3 = scmp.lt.s32.totalorder %s213_s23, %s213_s23 }
  0x2b   :  { %250 = vmatpush3.bf16.msra.mxu0 %v247_v17  ;;  %p313_p2 = scmp.ne.s32.totalorder %s213_s23, %s312_s2  ;;  %p318_p4 = scmp.lt.s32.totalorder %s312_s2, %s312_s2 }
  0x2c   :  { %56 = vadd.xlane.f32.xlu0 %v55_v3  ;;  %252 = vmatprep.subr.bf16.mxu0 %v251_v19 }
  0x2d   :  { %p319_p5 = por %p318_p4, %p317_p3 }
  0x2f   :  { %254 = vmatpush3.bf16.msra.mxu0 %v251_v19  ;;  %p320_p6 = pnand %p319_p5, %p313_p2 }
  0xb5   :  { %v54_v4 = vpop.xlane.xlu0 %53 }
  0xb6   :  { %v59_v5 = vmul.f32 0.03125, %v54_v4 }
  0xb8   :  { %v61_v6 = vsub.f32 %v49_v0, %v59_v5 }
  0xb9   :  { %v57_v7 = vpop.xlane.xlu0 %56 }
  0xba   :  { %v60_v8 = vmul.f32 0.03125, %v57_v7  ;;  %v63_v9 = vmul.f32 %v61_v6, %v61_v6 }
  0xbc   :  { %v62_v10 = vsub.f32 %v50_v1, %v60_v8  ;;  %v65_v11 = vsel %vm51_vm0, %v63_v9, 0.0 }
  0xbd   :  { %66 = vadd.xlane.f32.xlu1 %v65_v11 }
  0xbe   :  { %v64_v12 = vmul.f32 %v62_v10, %v62_v10 }
  0xc0   :  { %v68_v13 = vsel %vm51_vm0, %v64_v12, 0.0 }
  0xc1   :  { %69 = vadd.xlane.f32.xlu1 %v68_v13 }
 0x14a   :  { %v67_v20 = vpop.xlane.xlu1 %66 }
 0x14b   :  { %v72_v21 = vmul.f32 0.032258064, %v67_v20 }
 0x14d   :  { %260 = vrsqrt.f32 %v72_v21  ;;  %vm76_vm1 = vcmp.eq.f32.partialorder %v72_v21, inf  ;;  %v79_v26 = vand.u32 2147483648, %v72_v21  ;;  %vm78_vm2 = vcmp.eq.f32.partialorder %v72_v21, 0.0 }
 0x14e   :  { %v70_v22 = vpop.xlane.xlu1 %69 }
 0x14f   :  { %v73_v23 = vmul.f32 0.032258064, %v70_v22 }
 0x151   :  { %262 = vrsqrt.f32 %v73_v23  ;;  %vm83_vm3 = vcmp.eq.f32.partialorder %v73_v23, inf  ;;  %v86_v32 = vand.u32 2147483648, %v73_v23  ;;  %vm85_vm4 = vcmp.eq.f32.partialorder %v73_v23, 0.0 }
 0x157   :  { %v261_v24 = vpop.eup %260 }
 0x158   :  { %v75_v25 = vmul.f32 %v261_v24, %v72_v21 }
 0x15a   :  { %v77_v27 = vsel %vm76_vm1, %v72_v21, %v75_v25 }
 0x15b   :  { %v263_v28 = vpop.eup %262  ;;  %v80_v29 = vsel %vm78_vm2, %v79_v26, %v77_v27 }
 0x15c   :  { %v82_v30 = vmul.f32 %v263_v28, %v73_v23  ;;  %v88_v31 = vadd.f32 1e-06, %v80_v29 }
 0x15e   :  { %v84_v33 = vsel %vm83_vm3, %v73_v23, %v82_v30  ;;  %264 = vrcp.f32 %v88_v31 }
 0x15f   :  { %v87_v34 = vsel %vm85_vm4, %v86_v32, %v84_v33 }
 0x160   :  { %v89_v35 = vadd.f32 1e-06, %v87_v34 }
 0x162   :  { %266 = vrcp.f32 %v89_v35 }
 0x168   :  { %v265_v36 = vpop.eup %264 }
 0x169   :  { %v93_v38 = vmul.f32 %v265_v36, %v61_v6 }
 0x16b   :  { %v101_v40 = vmul.f32 %v225_v37, %v93_v38 }
 0x16c   :  { %v267_v41 = vpop.eup %266 }
 0x16d   :  { %v94_v42 = vmul.f32 %v267_v41, %v62_v10  ;;  %v110_v43 = vadd.f32 %v226_v39, %v101_v40 }
 0x16f   :  { %v102_v44 = vmul.f32 %v225_v37, %v94_v42  ;;  %244 = vmatprep.mubr.msk.f32.mxu0 %vm51_vm0, %v110_v43 }
 0x171   :  { %v111_v45 = vadd.f32 %v226_v39, %v102_v44 }
 0x173   :  { %245 = vmatmul.mubr.msk.f32.vlgmr.msra.gmra.mrb[0].mxu0 %vm51_vm0, %v111_v45 }
 0x246   :  { %v246_v47 = vpop.f32.mrb[0].mxu0 }
 0x247   :  { %v201_v48 = vadd.f32 %v246_v47, %v227_v46  ;;  %v195_v49 = vpop.f32.mrb[1].mxu0 }
 0x248   :  { %v196_v50 = vadd.f32 %v227_v46, %v195_v49 }
 0x249   :  { %206 = vst.msk [vmem:[#allocation7 + $0x8] sm:$0xff] %vm204_vm5, %v201_v48 }
 0x24a   :  { %205 = vst.msk [vmem:[#allocation7] sm:$0xff] %vm204_vm5, %v196_v50 }
 0x24b   :  { %323 = shalt.err (!%p320_p6)
}
 0x24c   :  { %s324_s4 = scalar_lea.hbm %s440_s5, 256 }
 0x24d   :  { %p325_p7 = scmp.ne.s32.totalorder %s440_s5, %s324_s4  ;;  %p328_p8 = scmp.lt.u32.totalorder %s324_s4, %s440_s5 }
 0x24f   :  { %p330_p9 = pnand %p328_p8, %p325_p7 }
 0x251   :  { %333 = shalt.err (!%p330_p9)
}
 0x252   :  { %218 = dma.vmem_to_hbm [thread:$0]  %s213_s23, 256, %s440_s5, [#allocation4], %s341_s28, %s341_s28, %s342_s29  }
 0x253   :  { %338 = dma.done.wait [#allocation4], 256  }
 0x254   :  { %339 = vsyncadd [#allocation4], 4294967040 }
 0x255   :  { %222 = vsyncpa [#allocation3], 1 }
 0x256   :  { %223 = vsyncpa [#allocation6], 1 }
 0x257   :  { %224 = vsyncpa [#allocation4], 1 }

</bundles_post_ra>
